<compile_context>
chip_gen: v6e
topology: v6e:2x2x1
jax: 0.10.0
libtpu: 0.0.40
codegen_flags: <defaults>
</compile_context>

<pallas_src>
import functools

import jax
import jax.numpy as jnp
from jax import lax
from jax.experimental import pallas as pl
from jax.experimental.pallas import tpu as pltpu

HIDDEN = 32        # fc1 output features (PyTorch)
HIDDEN_PAD = 128   # hidden padded to one full lane tile
W2_ROWS = 8        # fc2 weight row padded to a full sublane tile


def _discriminator_zz_kernel(z_ref, rz_ref, w1a_ref, w1b_ref, b1_ref, w2_ref,
                             o_ref):
    # z_ref, rz_ref : (TILE_N, latent)
    # w1a_ref/w1b_ref: (latent, HIDDEN_PAD)   b1_ref: (1, HIDDEN_PAD)
    # w2_ref        : (W2_ROWS, HIDDEN_PAD)   (row 0 = fc2 weights, rest zero)
    # o_ref         : (1, TILE_N)             lane-dense output row
    h = jnp.dot(z_ref[...], w1a_ref[...], preferred_element_type=jnp.float32)
    h = h + jnp.dot(rz_ref[...], w1b_ref[...],
                    preferred_element_type=jnp.float32)
    h = h + b1_ref[...]
    # LeakyReLU (PyTorch default negative_slope = 0.01).
    h = jnp.where(h > 0, h, jnp.float32(0.01) * h)
    # Dropout(p=0.2) -> identity in eval mode.
    # fc2 as a lane-dense row: (W2_ROWS, K) x (TILE_N, K)^T -> (W2_ROWS, TILE_N)
    # (A @ B.T contraction; fc2 bias already folded into w2/b1 padding).
    out = lax.dot_general(w2_ref[...], h, (((1,), (1,)), ((), ())),
                          preferred_element_type=jnp.float32)
    o_ref[...] = out[0:1, :].astype(o_ref.dtype)


def prepare_params(params, latent_dim):
    """One-time transform of PyTorch-layout params into kernel layout."""
    w1 = params["fc1_w"]                       # (HIDDEN, 2*latent_dim)
    b1 = params["fc1_b"]                       # (HIDDEN,)
    w2 = params["fc2_w"]                       # (1, HIDDEN)
    b2 = params["fc2_b"]                       # (1,)
    pad_h = HIDDEN_PAD - HIDDEN
    w1a = jnp.pad(w1[:, :latent_dim].T, ((0, 0), (0, pad_h)))   # (latent, 128)
    w1b = jnp.pad(w1[:, latent_dim:].T, ((0, 0), (0, pad_h)))   # (latent, 128)
    b1p = jnp.pad(b1, (0, pad_h)).reshape(1, HIDDEN_PAD)        # (1, 128)
    w2p = jnp.pad(w2, ((0, W2_ROWS - 1), (0, pad_h)))           # (8, 128)
    # Fold the fc2 bias into padded hidden column `HIDDEN`:
    #   pre-activation there is exactly 1.0 (w1 pads are zero), LeakyReLU(1)=1,
    #   and w2p[0, HIDDEN] = b2 adds the bias during the fc2 contraction.
    b1p = b1p.at[0, HIDDEN].set(1.0)
    w2p = w2p.at[0, HIDDEN].set(b2[0])
    return {"w1a": w1a.astype(jnp.float32), "w1b": w1b.astype(jnp.float32),
            "b1": b1p.astype(jnp.float32), "w2": w2p.astype(jnp.float32)}


@functools.partial(jax.jit, static_argnames=("tile_n",))
def discriminator_zz_forward(z, rec_z, kparams, tile_n=2048):
    """z, rec_z: (N, latent_dim) float32.  kparams: from prepare_params()."""
    n, latent = z.shape
    # Tile size: multiple of 128 rows, no larger than the (padded) batch.
    # tile_n up to ~8192 still fits v5e's 16 MiB scoped-VMEM default.
    tile_n = max(128, (tile_n // 128) * 128)
    tile_n = min(tile_n, pl.cdiv(n, 128) * 128)
    num_tiles = pl.cdiv(n, tile_n)
    n_pad = num_tiles * tile_n
    if n_pad != n:                                    # tail padding (zeros)
        z = jnp.pad(z, ((0, n_pad - n), (0, 0)))
        rec_z = jnp.pad(rec_z, ((0, n_pad - n), (0, 0)))

    row_spec = pl.BlockSpec((tile_n, latent), lambda i: (i, 0))

    def const_spec(arr):
        nd = arr.ndim
        return pl.BlockSpec(arr.shape, lambda i: (0,) * nd)

    flops = 2 * n_pad * (2 * latent * HIDDEN_PAD) + 2 * n_pad * HIDDEN_PAD * W2_ROWS
    bytes_accessed = 4 * (2 * n_pad * latent + n_pad
                          + 2 * latent * HIDDEN_PAD
                          + (W2_ROWS + 1) * HIDDEN_PAD)

    out_row = pl.pallas_call(
        _discriminator_zz_kernel,
        out_shape=jax.ShapeDtypeStruct((1, n_pad), jnp.float32),
        grid=(num_tiles,),
        in_specs=[
            row_spec,                      # z rows (pipelined)
            row_spec,                      # rec_z rows (pipelined)
            const_spec(kparams["w1a"]),    # VMEM-resident weights
            const_spec(kparams["w1b"]),
            const_spec(kparams["b1"]),
            const_spec(kparams["w2"]),
        ],
        out_specs=pl.BlockSpec((1, tile_n), lambda i: (0, i)),
        compiler_params=pltpu.CompilerParams(
            dimension_semantics=("parallel",)),
        cost_estimate=pl.CostEstimate(
            flops=flops, transcendentals=0, bytes_accessed=bytes_accessed),
    )(z, rec_z, kparams["w1a"], kparams["w1b"], kparams["b1"], kparams["w2"])

    return out_row.reshape(n_pad, 1)[:n]


def init_params(latent_dim=32, seed=0):
    """Deterministic synthetic parameters with PyTorch nn.Linear shapes."""
    key = jax.random.PRNGKey(seed)
    k1, k2, k3, k4 = jax.random.split(key, 4)
    d_in = latent_dim * 2
    s1 = 1.0 / jnp.sqrt(d_in)
    s2 = 1.0 / jnp.sqrt(32.0)
    return {
        "fc1_w": jax.random.uniform(k1, (32, d_in), jnp.float32, -s1, s1),
        "fc1_b": jax.random.uniform(k2, (32,), jnp.float32, -s1, s1),
        "fc2_w": jax.random.uniform(k3, (1, 32), jnp.float32, -s2, s2),
        "fc2_b": jax.random.uniform(k4, (1,), jnp.float32, -s2, s2),
    }


def reference_forward(z, rec_z, params):
    """Pure-JAX reference of the PyTorch forward (eval mode)."""
    x = jnp.concatenate([z, rec_z], axis=1)
    h = x @ params["fc1_w"].T + params["fc1_b"]
    h = jnp.where(h > 0, h, 0.01 * h)
    return h @ params["fc2_w"].T + params["fc2_b"]


if __name__ == "__main__":
    latent_dim = 32
    batch = 8

    key = jax.random.PRNGKey(0)
    kz, kr = jax.random.split(key)
    z = jax.random.normal(kz, (batch, latent_dim), jnp.float32)
    rec_z = jax.random.normal(kr, (batch, latent_dim), jnp.float32)

    params = init_params(latent_dim=latent_dim, seed=0)
    kparams = prepare_params(params, latent_dim)   # one-time weight prep

    out = discriminator_zz_forward(z, rec_z, kparams)
    out = jax.block_until_ready(out)

    ref = reference_forward(z, rec_z, params)
    assert out.shape == (batch, 1), out.shape
    assert jnp.allclose(out, ref, atol=1e-4, rtol=1e-4), (out, ref)

    print("KERNEL_OK")
</pallas_src>

<mosaic_0001>
module attributes {stable_mosaic.version = 11 : i64} {
  func.func @_discriminator_zz_kernel(%arg0: i32, %arg1: memref<128x32xf32, #tpu.memory_space<vmem>>, %arg2: memref<128x32xf32, #tpu.memory_space<vmem>>, %arg3: memref<32x128xf32, #tpu.memory_space<vmem>>, %arg4: memref<32x128xf32, #tpu.memory_space<vmem>>, %arg5: memref<1x128xf32, #tpu.memory_space<vmem>>, %arg6: memref<8x128xf32, #tpu.memory_space<vmem>>, %arg7: memref<1x128xf32, #tpu.memory_space<vmem>>) attributes {dimension_semantics = [#tpu.dimension_semantics<parallel>], iteration_bounds = array<i64: 1>, scalar_prefetch = 0 : i64, scratch_operands = 0 : i64, tpu.core_type = #tpu.core_type<tc>, window_params = [{transform_indices = @transform_0, window_bounds = array<i64: 128, 32>}, {transform_indices = @transform_1, window_bounds = array<i64: 128, 32>}, {pipeline_mode = #tpu.pipeline_mode<synchronous>, transform_indices = @transform_2, window_bounds = array<i64: 32, 128>}, {pipeline_mode = #tpu.pipeline_mode<synchronous>, transform_indices = @transform_3, window_bounds = array<i64: 32, 128>}, {pipeline_mode = #tpu.pipeline_mode<synchronous>, transform_indices = @transform_4, window_bounds = array<i64: 1, 128>}, {pipeline_mode = #tpu.pipeline_mode<synchronous>, transform_indices = @transform_5, window_bounds = array<i64: 8, 128>}, {transform_indices = @transform_6, window_bounds = array<i64: 1, 128>}]} {
    %c0 = arith.constant 0 : index
    %c0_0 = arith.constant 0 : index
    %0 = vector.load %arg1[%c0, %c0_0] : memref<128x32xf32, #tpu.memory_space<vmem>>, vector<128x32xf32>
    %c0_1 = arith.constant 0 : index
    %c0_2 = arith.constant 0 : index
    %1 = vector.load %arg3[%c0_1, %c0_2] : memref<32x128xf32, #tpu.memory_space<vmem>>, vector<32x128xf32>
    %cst = arith.constant dense<0.000000e+00> : vector<128x128xf32>
    %2 = tpu.matmul %0, %1, %cst {dimension_numbers = #tpu.dot_dimension_numbers<[1], [0], [0], [1], [0, 0, 1, 1], [], []>} : vector<128x32xf32>, vector<32x128xf32>, vector<128x128xf32> -> vector<128x128xf32>
    %c0_3 = arith.constant 0 : index
    %c0_4 = arith.constant 0 : index
    %3 = vector.load %arg2[%c0_3, %c0_4] : memref<128x32xf32, #tpu.memory_space<vmem>>, vector<128x32xf32>
    %c0_5 = arith.constant 0 : index
    %c0_6 = arith.constant 0 : index
    %4 = vector.load %arg4[%c0_5, %c0_6] : memref<32x128xf32, #tpu.memory_space<vmem>>, vector<32x128xf32>
    %cst_7 = arith.constant dense<0.000000e+00> : vector<128x128xf32>
    %5 = tpu.matmul %3, %4, %cst_7 {dimension_numbers = #tpu.dot_dimension_numbers<[1], [0], [0], [1], [0, 0, 1, 1], [], []>} : vector<128x32xf32>, vector<32x128xf32>, vector<128x128xf32> -> vector<128x128xf32>
    %6 = arith.addf %2, %5 : vector<128x128xf32>
    %c0_8 = arith.constant 0 : index
    %c0_9 = arith.constant 0 : index
    %7 = vector.load %arg5[%c0_8, %c0_9] : memref<1x128xf32, #tpu.memory_space<vmem>>, vector<1x128xf32>
    %8 = vector.broadcast %7 : vector<1x128xf32> to vector<128x128xf32>
    %9 = arith.addf %6, %8 : vector<128x128xf32>
    %cst_10 = arith.constant 0.000000e+00 : f32
    %10 = vector.broadcast %cst_10 : f32 to vector<128x128xf32>
    %11 = arith.cmpf ogt, %9, %10 : vector<128x128xf32>
    %cst_11 = arith.constant 0.00999999977 : f32
    %12 = vector.broadcast %cst_11 : f32 to vector<128x128xf32>
    %13 = arith.mulf %12, %9 : vector<128x128xf32>
    %14 = arith.select %11, %9, %13 : vector<128x128xi1>, vector<128x128xf32>
    %c0_12 = arith.constant 0 : index
    %c0_13 = arith.constant 0 : index
    %15 = vector.load %arg6[%c0_12, %c0_13] : memref<8x128xf32, #tpu.memory_space<vmem>>, vector<8x128xf32>
    %cst_14 = arith.constant dense<0.000000e+00> : vector<8x128xf32>
    %16 = tpu.matmul %15, %14, %cst_14 {dimension_numbers = #tpu.dot_dimension_numbers<[1], [1], [0], [0], [0, 0, 1, 0], [], []>} : vector<8x128xf32>, vector<128x128xf32>, vector<8x128xf32> -> vector<8x128xf32>
    %17 = vector.extract_strided_slice %16 {offsets = [0, 0], sizes = [1, 128], strides = [1, 1]} : vector<8x128xf32> to vector<1x128xf32>
    %c0_15 = arith.constant 0 : index
    %c0_16 = arith.constant 0 : index
    %18 = vector.load %arg7[%c0_15, %c0_16] : memref<1x128xf32, #tpu.memory_space<vmem>>, vector<1x128xf32>
    tpu.vector_store %arg7[%c0_15, %c0_16], %17 {strides = array<i32>} : memref<1x128xf32, #tpu.memory_space<vmem>>, vector<1x128xf32>,
    return
  }
  func.func @transform_0(%arg0: i32) -> (i32, i32) {
    %c0_i32 = arith.constant 0 : i32
    %c0_i32_0 = arith.constant 0 : i32
    return %arg0, %c0_i32 : i32, i32
  }
  func.func @transform_1(%arg0: i32) -> (i32, i32) {
    %c0_i32 = arith.constant 0 : i32
    %c0_i32_0 = arith.constant 0 : i32
    return %arg0, %c0_i32 : i32, i32
  }
  func.func @transform_2(%arg0: i32) -> (i32, i32) {
    %c0_i32 = arith.constant 0 : i32
    %c0_i32_0 = arith.constant 0 : i32
    %c0_i32_1 = arith.constant 0 : i32
    return %c0_i32, %c0_i32_0 : i32, i32
  }
  func.func @transform_3(%arg0: i32) -> (i32, i32) {
    %c0_i32 = arith.constant 0 : i32
    %c0_i32_0 = arith.constant 0 : i32
    %c0_i32_1 = arith.constant 0 : i32
    return %c0_i32, %c0_i32_0 : i32, i32
  }
  func.func @transform_4(%arg0: i32) -> (i32, i32) {
    %c0_i32 = arith.constant 0 : i32
    %c0_i32_0 = arith.constant 0 : i32
    %c0_i32_1 = arith.constant 0 : i32
    return %c0_i32, %c0_i32_0 : i32, i32
  }
  func.func @transform_5(%arg0: i32) -> (i32, i32) {
    %c0_i32 = arith.constant 0 : i32
    %c0_i32_0 = arith.constant 0 : i32
    %c0_i32_1 = arith.constant 0 : i32
    return %c0_i32, %c0_i32_0 : i32, i32
  }
  func.func @transform_6(%arg0: i32) -> (i32, i32) {
    %c0_i32 = arith.constant 0 : i32
    %c0_i32_0 = arith.constant 0 : i32
    return %c0_i32, %arg0 : i32, i32
  }
}

</mosaic_0001>

<bundles_post_ra>
// kernel: discriminator_zz_forward.1
= control target key start
LH: loop header
LB: loop body
LE: loop exit
PB: predicated region body
PF: predicated region fallthrough
CT: control target
= control target key end

     0   :  { %vm63_vm0 = vcmask 261120   ;;  %v788_v40 = vmov 0.0   ;;  %vm789_vm1 = vmmov 0   ;;  %s1054_s3 = inlined_call_operand.vmem [shape: f32[32,128], index: 3, kind: input, shape index: {}]   ;;  %s1055_s1 = inlined_call_operand.vmem [shape: f32[128,32], index: 1, kind: input, shape index: {}]   ;;  %s1056_s2 = inlined_call_operand.vmem [shape: f32[32,128], index: 2, kind: input, shape index: {}]   ;;  %s1057_s0 = inlined_call_operand.vmem [shape: f32[128,32], index: 0, kind: input, shape index: {}]   ;;  %s1058_s4 = inlined_call_operand.vmem [shape: f32[1,128], index: 4, kind: input, shape index: {}]   ;;  %s1059_s5 = inlined_call_operand.vmem [shape: f32[8,128], index: 5, kind: input, shape index: {}]   ;;  %s1060_s6 = inlined_call_operand.vmem [shape: f32[1,128], index: 6, kind: output, shape index: {}]  }
   0x1   :  { %v62_v0 = vld [vmem:[%s1054_s3 + $0x18] sm:$0xff]  ;;  %v61_v1 = vld [vmem:[%s1054_s3 + $0x10] sm:$0xff]  ;;  %v43_v2 = vld [vmem:[%s1055_s1] sm:$0xff]  ;;  %751 = vmatprep.subr.mxu0 %v788_v40  ;;  %783 = vmatprep.mubr.msk.f32.mxu0 %vm789_vm1, %v788_v40 }
   0x2   :  { %687 = vmatprep.subr.mxu1 %v62_v0  ;;  %v60_v3 = vld [vmem:[%s1054_s3 + $0x8] sm:$0xff]  ;;  %695 = vmatprep.mubr.msk.f32.mxu1 %vm63_vm0, %v43_v2  ;;  %v59_v4 = vld [vmem:[%s1054_s3] sm:$0xff]  ;;  %v42_v6 = vld [vmem:[%s1056_s2 + $0x18] sm:$0xff] }
   0x3   :  { %688 = vmatpush3.msra.mxu1 %v62_v0  ;;  %v44_v5 = vld [vmem:[%s1055_s1 + $0x8] sm:$0xff]  ;;  %v45_v7 = vld [vmem:[%s1055_s1 + $0x10] sm:$0xff]  ;;  %v46_v9 = vld [vmem:[%s1055_s1 + $0x18] sm:$0xff] }
   0x4   :  { %689 = vmatprep.subr.mxu1 %v61_v1  ;;  %v41_v8 = vld [vmem:[%s1056_s2 + $0x10] sm:$0xff]  ;;  %v40_v10 = vld [vmem:[%s1056_s2 + $0x8] sm:$0xff]  ;;  %v47_v11 = vld [vmem:[%s1055_s1 + $0x20] sm:$0xff] }
   0x5   :  { %690 = vmatpush3.msra.mxu1 %v61_v1  ;;  %v39_v12 = vld [vmem:[%s1056_s2] sm:$0xff]  ;;  %v48_v13 = vld [vmem:[%s1055_s1 + $0x28] sm:$0xff]  ;;  %v49_v14 = vld [vmem:[%s1055_s1 + $0x30] sm:$0xff] }
   0x6   :  { %691 = vmatprep.subr.mxu1 %v60_v3  ;;  %v50_v15 = vld [vmem:[%s1055_s1 + $0x38] sm:$0xff]  ;;  %v51_v16 = vld [vmem:[%s1055_s1 + $0x40] sm:$0xff]  ;;  %v52_v17 = vld [vmem:[%s1055_s1 + $0x48] sm:$0xff] }
   0x7   :  { %692 = vmatpush3.msra.mxu1 %v60_v3  ;;  %v53_v18 = vld [vmem:[%s1055_s1 + $0x50] sm:$0xff]  ;;  %v54_v19 = vld [vmem:[%s1055_s1 + $0x58] sm:$0xff]  ;;  %v55_v20 = vld [vmem:[%s1055_s1 + $0x60] sm:$0xff] }
   0x8   :  { %693 = vmatprep.subr.mxu1 %v59_v4  ;;  %v56_v21 = vld [vmem:[%s1055_s1 + $0x68] sm:$0xff]  ;;  %v57_v22 = vld [vmem:[%s1055_s1 + $0x70] sm:$0xff]  ;;  %v58_v23 = vld [vmem:[%s1055_s1 + $0x78] sm:$0xff] }
   0x9   :  { %694 = vmatpush3.msra.mxu1 %v59_v4  ;;  %v23_v24 = vld [vmem:[%s1057_s0] sm:$0xff]  ;;  %v24_v25 = vld [vmem:[%s1057_s0 + $0x8] sm:$0xff]  ;;  %v25_v26 = vld [vmem:[%s1057_s0 + $0x10] sm:$0xff] }
   0xa   :  { %696 = vmatmul.mubr.msk.f32.vlgmr.msra.gmra.mxu1 %vm63_vm0, %v44_v5  ;;  %719 = vmatprep.subr.mxu1 %v42_v6  ;;  %v26_v27 = vld [vmem:[%s1057_s0 + $0x18] sm:$0xff]  ;;  %v27_v28 = vld [vmem:[%s1057_s0 + $0x20] sm:$0xff]  ;;  %v28_v29 = vld [vmem:[%s1057_s0 + $0x28] sm:$0xff] }
   0xb   :  { %720 = vmatpush3.msra.mxu1 %v42_v6  ;;  %698 = vmatprep.mubr.msk.f32.mxu1 %vm63_vm0, %v45_v7  ;;  %v29_v30 = vld [vmem:[%s1057_s0 + $0x30] sm:$0xff]  ;;  %v30_v31 = vld [vmem:[%s1057_s0 + $0x38] sm:$0xff]  ;;  %v31_v32 = vld [vmem:[%s1057_s0 + $0x40] sm:$0xff] }
   0xc   :  { %721 = vmatprep.subr.mxu1 %v41_v8  ;;  %v32_v33 = vld [vmem:[%s1057_s0 + $0x48] sm:$0xff]  ;;  %v33_v34 = vld [vmem:[%s1057_s0 + $0x50] sm:$0xff]  ;;  %v34_v35 = vld [vmem:[%s1057_s0 + $0x58] sm:$0xff] }
   0xd   :  { %722 = vmatpush3.msra.mxu1 %v41_v8  ;;  %v35_v36 = vld [vmem:[%s1057_s0 + $0x60] sm:$0xff]  ;;  %v36_v37 = vld [vmem:[%s1057_s0 + $0x68] sm:$0xff]  ;;  %v37_v38 = vld [vmem:[%s1057_s0 + $0x70] sm:$0xff] }
   0xe   :  { %699 = vmatmul.mubr.msk.f32.gmra.mxu1 %vm63_vm0, %v46_v9  ;;  %723 = vmatprep.subr.mxu1 %v40_v10  ;;  %v38_v39 = vld [vmem:[%s1057_s0 + $0x78] sm:$0xff] }
   0xf   :  { %701 = vmatprep.mubr.msk.f32.mxu1 %vm63_vm0, %v47_v11  ;;  %724 = vmatpush3.msra.mxu1 %v40_v10 }
  0x10   :  { %725 = vmatprep.subr.mxu1 %v39_v12 }
  0x11   :  { %726 = vmatpush3.msra.mxu1 %v39_v12 }
  0x12   :  { %702 = vmatmul.mubr.msk.f32.gmra.mxu1 %vm63_vm0, %v48_v13  ;;  %v1004_v13 = vld [vmem:[%s1058_s4] ss:$0 sm:$0xff] }
  0x13   :  { %704 = vmatprep.mubr.msk.f32.mxu1 %vm63_vm0, %v49_v14 }
  0x16   :  { %705 = vmatmul.mubr.msk.f32.gmra.mxu1 %vm63_vm0, %v50_v15 }
  0x17   :  { %707 = vmatprep.mubr.msk.f32.mxu1 %vm63_vm0, %v51_v16 }
  0x1a   :  { %708 = vmatmul.mubr.msk.f32.gmra.mxu1 %vm63_vm0, %v52_v17 }
  0x1b   :  { %710 = vmatprep.mubr.msk.f32.mxu1 %vm63_vm0, %v53_v18 }
  0x1e   :  { %711 = vmatmul.mubr.msk.f32.gmra.mxu1 %vm63_vm0, %v54_v19 }
  0x1f   :  { %713 = vmatprep.mubr.msk.f32.mxu1 %vm63_vm0, %v55_v20 }
  0x22   :  { %714 = vmatmul.mubr.msk.f32.gmra.mxu1 %vm63_vm0, %v56_v21 }
  0x23   :  { %716 = vmatprep.mubr.msk.f32.mxu1 %vm63_vm0, %v57_v22 }
  0x26   :  { %717 = vmatmul.mubr.msk.f32.gmra.mxu1 %vm63_vm0, %v58_v23 }
  0x27   :  { %727 = vmatprep.mubr.msk.f32.mxu1 %vm63_vm0, %v23_v24 }
  0x2a   :  { %728 = vmatmul.mubr.msk.f32.vlgmr.msra.gmra.mxu1 %vm63_vm0, %v24_v25 }
  0x2b   :  { %730 = vmatprep.mubr.msk.f32.mxu1 %vm63_vm0, %v25_v26 }
  0x2e   :  { %731 = vmatmul.mubr.msk.f32.gmra.mxu1 %vm63_vm0, %v26_v27 }
  0x2f   :  { %733 = vmatprep.mubr.msk.f32.mxu1 %vm63_vm0, %v27_v28 }
  0x32   :  { %734 = vmatmul.mubr.msk.f32.gmra.mxu1 %vm63_vm0, %v28_v29 }
  0x33   :  { %736 = vmatprep.mubr.msk.f32.mxu1 %vm63_vm0, %v29_v30 }
  0x36   :  { %737 = vmatmul.mubr.msk.f32.gmra.mxu1 %vm63_vm0, %v30_v31 }
  0x37   :  { %739 = vmatprep.mubr.msk.f32.mxu1 %vm63_vm0, %v31_v32 }
  0x3a   :  { %740 = vmatmul.mubr.msk.f32.gmra.mxu1 %vm63_vm0, %v32_v33 }
  0x3b   :  { %742 = vmatprep.mubr.msk.f32.mxu1 %vm63_vm0, %v33_v34 }
  0x3e   :  { %743 = vmatmul.mubr.msk.f32.gmra.mxu1 %vm63_vm0, %v34_v35 }
  0x3f   :  { %745 = vmatprep.mubr.msk.f32.mxu1 %vm63_vm0, %v35_v36 }
  0x42   :  { %746 = vmatmul.mubr.msk.f32.gmra.mxu1 %vm63_vm0, %v36_v37 }
  0x43   :  { %748 = vmatprep.mubr.msk.f32.mxu1 %vm63_vm0, %v37_v38 }
  0x46   :  { %749 = vmatmul.mubr.msk.f32.gmra.mxu1 %vm63_vm0, %v38_v39 }
  0xca   :  { %v697_v41 = vpop.f32.mrf.mxu1 }
  0xcc   :  { %v178_v42 = vpop.f32.mrf.mxu1 }
  0xce   :  { %v700_v43 = vpop.f32.mrf.mxu1 }
  0xd0   :  { %v188_v44 = vpop.f32.mrf.mxu1 }
  0xd2   :  { %v979_v45 = vpop.f32.mrf.mxu1 }
  0xd4   :  { %v981_v46 = vpop.f32.mrf.mxu1 }
  0xd6   :  { %v983_v47 = vpop.f32.mrf.mxu1 }
  0xd8   :  { %v985_v48 = vpop.f32.mrf.mxu1 }
  0xda   :  { %v709_v49 = vpop.f32.mrf.mxu1 }
  0xdc   :  { %v987_v50 = vpop.f32.mrf.mxu1 }
  0xde   :  { %v712_v51 = vpop.f32.mrf.mxu1 }
  0xe0   :  { %v228_v52 = vpop.f32.mrf.mxu1 }
  0xe2   :  { %v715_v53 = vpop.f32.mrf.mxu1 }
  0xe4   :  { %v238_v54 = vpop.f32.mrf.mxu1 }
  0xe6   :  { %v718_v55 = vpop.f32.mrf.mxu1 }
  0xe8   :  { %v248_v56 = vpop.f32.mrf.mxu1 }
  0xea   :  { %v729_v57 = vpop.f32.mrf.mxu1 }
  0xeb   :  { %v989_v58 = vadd.f32 %v729_v57, %v697_v41 }
  0xec   :  { %v371_v59 = vpop.f32.mrf.mxu1 }
  0xed   :  { %v991_v60 = vadd.f32 %v371_v59, %v178_v42 }
  0xee   :  { %v732_v61 = vpop.f32.mrf.mxu1 }
  0xef   :  { %v993_v62 = vadd.f32 %v732_v61, %v700_v43 }
  0xf0   :  { %v381_v63 = vpop.f32.mrf.mxu1 }
  0xf1   :  { %v995_v0 = vadd.f32 %v381_v63, %v188_v44 }
  0xf2   :  { %v997_v1 = vpop.f32.mrf.mxu1 }
  0xf4   :  { %v999_v2 = vpop.f32.mrf.mxu1 }
  0xf6   :  { %v738_v3 = vpop.f32.mrf.mxu1 }
  0xf7   :  { %v407_v41 = vadd.f32 %v738_v3, %v983_v47  ;;  %v397_v47 = vadd.f32 %v997_v1, %v979_v45  ;;  %v460_v1 = vadd.f32 %v1004_v13, %v993_v62 }
  0xf8   :  { %v401_v4 = vpop.f32.mrf.mxu1 }
  0xf9   :  { %vm476_vm14 = vcmp.gt.f32.partialorder %v460_v1, 0.0 }
  0xfa   :  { %v741_v5 = vpop.f32.mrf.mxu1 }
  0xfb   :  { %v417_v32 = vadd.f32 %v741_v5, %v709_v49  ;;  %v464_v49 = vadd.f32 %v1004_v13, %v407_v41  ;;  %v492_v5 = vmul.f32 0.01, %v460_v1 }
  0xfc   :  { %v411_v6 = vpop.f32.mrf.mxu1 }
  0xfd   :  { %v466_v36 = vadd.f32 %v1004_v13, %v417_v32  ;;  %v412_v37 = vadd.f32 %v411_v6, %v987_v50  ;;  %v402_v50 = vadd.f32 %v401_v4, %v985_v48  ;;  %vm480_vm10 = vcmp.gt.f32.partialorder %v464_v49, 0.0 }
  0xfe   :  { %v744_v7 = vpop.f32.mrf.mxu1  ;;  %v392_v48 = vadd.f32 %v999_v2, %v981_v46  ;;  %v459_v46 = vadd.f32 %v1004_v13, %v995_v0  ;;  %v458_v6 = vadd.f32 %v1004_v13, %v989_v58 }
  0xff   :  { %v427_v24 = vadd.f32 %v744_v7, %v712_v51  ;;  %v465_v42 = vadd.f32 %v1004_v13, %v412_v37  ;;  %v498_v44 = vmul.f32 0.01, %v466_v36  ;;  %vm482_vm8 = vcmp.gt.f32.partialorder %v466_v36, 0.0 }
 0x100   :  { %v421_v8 = vpop.f32.mrf.mxu1  ;;  %v461_v45 = vadd.f32 %v1004_v13, %v392_v48  ;;  %v508_v7 = vsel %vm476_vm14, %v460_v1, %v492_v5  ;;  %v491_v62 = vmul.f32 0.01, %v459_v46  ;;  %vm475_vm15 = vcmp.gt.f32.partialorder %v459_v46, 0.0 }
 0x101   :  { %v468_v28 = vadd.f32 %v1004_v13, %v427_v24  ;;  %v422_v29 = vadd.f32 %v421_v8, %v228_v52  ;;  %v514_v51 = vsel %vm482_vm8, %v466_v36, %v498_v44  ;;  %v497_v52 = vmul.f32 0.01, %v465_v42 }
 0x102   :  { %v747_v9 = vpop.f32.mrf.mxu1  ;;  %vm481_vm9 = vcmp.gt.f32.partialorder %v465_v42, 0.0  ;;  %v493_v4 = vmul.f32 0.01, %v461_v45  ;;  %vm477_vm13 = vcmp.gt.f32.partialorder %v461_v45, 0.0  ;;  %v457_v8 = vadd.f32 %v1004_v13, %v991_v60 }
 0x103   :  { %v437_v15 = vadd.f32 %v747_v9, %v715_v53  ;;  %v467_v33 = vadd.f32 %v1004_v13, %v422_v29  ;;  %v500_v35 = vmul.f32 0.01, %v468_v28  ;;  %vm484_vm6 = vcmp.gt.f32.partialorder %v468_v28, 0.0 }
 0x104   :  { %v431_v10 = vpop.f32.mrf.mxu1  ;;  %v463_v53 = vadd.f32 %v1004_v13, %v402_v50  ;;  %v509_v2 = vsel %vm477_vm13, %v461_v45, %v493_v4  ;;  %v507_v9 = vsel %vm475_vm15, %v459_v46, %v491_v62  ;;  %v490_v0 = vmul.f32 0.01, %v458_v6 }
 0x105   :  { %v470_v20 = vadd.f32 %v1004_v13, %v437_v15  ;;  %v432_v21 = vadd.f32 %v431_v10, %v238_v54  ;;  %v516_v38 = vsel %vm484_vm6, %v468_v28, %v500_v35  ;;  %v499_v39 = vmul.f32 0.01, %v467_v33 }
 0x106   :  { %v750_v11 = vpop.f32.mrf.mxu1  ;;  %vm483_vm7 = vcmp.gt.f32.partialorder %v467_v33, 0.0  ;;  %v513_v54 = vsel %vm481_vm9, %v465_v42, %v497_v52  ;;  %v495_v59 = vmul.f32 0.01, %v463_v53  ;;  %vm479_vm11 = vcmp.gt.f32.partialorder %v463_v53, 0.0 }
 0x107   :  { %v447_v12 = vadd.f32 %v750_v11, %v718_v55  ;;  %v469_v25 = vadd.f32 %v1004_v13, %v432_v21  ;;  %v502_v27 = vmul.f32 0.01, %v470_v20  ;;  %vm486_vm4 = vcmp.gt.f32.partialorder %v470_v20, 0.0 }
 0x108   :  { %v441_v14 = vpop.f32.mrf.mxu1  ;;  %v515_v43 = vsel %vm483_vm7, %v467_v33, %v499_v39  ;;  %v496_v55 = vmul.f32 0.01, %v464_v49  ;;  %v511_v61 = vsel %vm479_vm11, %v463_v53, %v495_v59  ;;  %vm474_vm0 = vcmp.gt.f32.partialorder %v458_v6, 0.0 }
 0x109   :  { %v472_v16 = vadd.f32 %v1004_v13, %v447_v12  ;;  %v442_v17 = vadd.f32 %v441_v14, %v248_v56  ;;  %v518_v30 = vsel %vm486_vm4, %v470_v20, %v502_v27  ;;  %v501_v31 = vmul.f32 0.01, %v469_v25  ;;  %v521_v12 = vld [vmem:[%s1059_s5] sm:$0xff] }
 0x10a   :  { %vm485_vm5 = vcmp.gt.f32.partialorder %v469_v25, 0.0  ;;  %v462_v56 = vadd.f32 %v1004_v13, %v397_v47  ;;  %v512_v57 = vsel %vm480_vm10, %v464_v49, %v496_v55  ;;  %v506_v10 = vsel %vm474_vm0, %v458_v6, %v490_v0 }
 0x10b   :  { %v471_v18 = vadd.f32 %v1004_v13, %v442_v17  ;;  %vm488_vm2 = vcmp.gt.f32.partialorder %v472_v16, 0.0  ;;  %v504_v19 = vmul.f32 0.01, %v472_v16  ;;  %v517_v34 = vsel %vm485_vm5, %v469_v25, %v501_v31 }
 0x10c   :  { %v494_v63 = vmul.f32 0.01, %v462_v56  ;;  %vm478_vm12 = vcmp.gt.f32.partialorder %v462_v56, 0.0  ;;  %v489_v11 = vmul.f32 0.01, %v457_v8  ;;  %vm473_vm1 = vcmp.gt.f32.partialorder %v457_v8, 0.0 }
 0x10d   :  { %v520_v22 = vsel %vm488_vm2, %v472_v16, %v504_v19  ;;  %v503_v23 = vmul.f32 0.01, %v471_v18  ;;  %vm487_vm3 = vcmp.gt.f32.partialorder %v471_v18, 0.0 }
 0x10e   :  { %752 = vmatpush3.xpose.msra.mxu0 %v520_v22  ;;  %v510_v3 = vsel %vm478_vm12, %v462_v56, %v494_v63  ;;  %v505_v58 = vsel %vm473_vm1, %v457_v8, %v489_v11 }
 0x10f   :  { %753 = vmatprep.subr.mxu0 %v788_v40  ;;  %v519_v26 = vsel %vm487_vm3, %v471_v18, %v503_v23 }
 0x112   :  { %754 = vmatpush3.xpose.msra.mxu0 %v519_v26 }
 0x113   :  { %755 = vmatprep.subr.mxu0 %v788_v40 }
 0x116   :  { %756 = vmatpush3.xpose.msra.mxu0 %v518_v30 }
 0x117   :  { %757 = vmatprep.subr.mxu0 %v788_v40 }
 0x11a   :  { %758 = vmatpush3.xpose.msra.mxu0 %v517_v34 }
 0x11b   :  { %759 = vmatprep.subr.mxu0 %v788_v40 }
 0x11e   :  { %760 = vmatpush3.xpose.msra.mxu0 %v516_v38 }
 0x11f   :  { %761 = vmatprep.subr.mxu0 %v788_v40 }
 0x122   :  { %762 = vmatpush3.xpose.msra.mxu0 %v515_v43 }
 0x123   :  { %763 = vmatprep.subr.mxu0 %v788_v40 }
 0x126   :  { %764 = vmatpush3.xpose.msra.mxu0 %v514_v51 }
 0x127   :  { %765 = vmatprep.subr.mxu0 %v788_v40 }
 0x12a   :  { %766 = vmatpush3.xpose.msra.mxu0 %v513_v54 }
 0x12b   :  { %767 = vmatprep.subr.mxu0 %v788_v40 }
 0x12e   :  { %768 = vmatpush3.xpose.msra.mxu0 %v512_v57 }
 0x12f   :  { %769 = vmatprep.subr.mxu0 %v788_v40 }
 0x132   :  { %770 = vmatpush3.xpose.msra.mxu0 %v511_v61 }
 0x133   :  { %771 = vmatprep.subr.mxu0 %v788_v40 }
 0x136   :  { %772 = vmatpush3.xpose.msra.mxu0 %v510_v3 }
 0x137   :  { %773 = vmatprep.subr.mxu0 %v788_v40 }
 0x13a   :  { %774 = vmatpush3.xpose.msra.mxu0 %v509_v2 }
 0x13b   :  { %775 = vmatprep.subr.mxu0 %v788_v40 }
 0x13e   :  { %776 = vmatpush3.xpose.msra.mxu0 %v508_v7 }
 0x13f   :  { %777 = vmatprep.subr.mxu0 %v788_v40 }
 0x142   :  { %778 = vmatpush3.xpose.msra.mxu0 %v507_v9 }
 0x143   :  { %779 = vmatprep.subr.mxu0 %v788_v40 }
 0x146   :  { %780 = vmatpush3.xpose.msra.mxu0 %v506_v10 }
 0x147   :  { %781 = vmatprep.subr.mxu0 %v788_v40 }
 0x14a   :  { %782 = vmatpush3.xpose.msra.mxu0 %v505_v58 }
 0x14d   :  { %784 = vmatmul.mubr.f32.vlgmr.msra.gmra.mxu0 %v521_v12 }
 0x20d   :  { %v588_v60 = vpop.f32.mrf.mxu0 }
 0x20e   :  { %592 = vst [vmem:[%s1060_s6] sm:$0x1] %v588_v60 }
 0x20f   :  { %v785_v13 = vpop.f32.mrf.mxu0 }

</bundles_post_ra>
